<compile_context>
chip_gen: v7x
topology: tpu7x:2x2x1
jax: 0.10.0
libtpu: 0.0.40
codegen_flags: <defaults>
</compile_context>

<pallas_src>
import functools

import jax
import jax.numpy as jnp
from jax.experimental import pallas as pl
from jax.experimental.pallas import tpu as pltpu

LANE = 128
_SRC_COL = LANE - 2          # column of w_aug holding W @ att_src^T
_DST_COL = LANE - 1          # column of w_aug holding W @ att_dst^T
_NEG_INF = -1e30


def _vmem_limit_bytes():
    """Generation-aware scoped-VMEM limit.

    v7x has only 64 MiB physical VMEM -> cap at ~48 MiB; v5e/v6e have 128 MiB
    -> raise well above the 32 MiB scoped default. Falls back to the
    v7x-safe value if the query is unavailable.
    """
    try:
        cap = pltpu.get_tpu_info().vmem_capacity_bytes
    except Exception:  # older jax / CPU tracing
        return 48 * 1024 * 1024
    return min(int(cap * 3 // 4), 100 * 1024 * 1024)


def _gat_layer(h_bf16, mask_ref, w_aug, bias_row):
    """Dense single-head GATConv with folded attention projections.

    h_bf16:   [N, 128] bf16 node features (zero-padded lanes).
    mask_ref: [N, N] bf16 additive mask ref (0 on edges j->i incl. self
              loops, -1e30 elsewhere); cast fuses into the add.
    w_aug:    [128, 128] bf16; features in cols [:Fout], att projections in
              cols 126/127 (zero rows beyond Fin kill padded-lane garbage).
    bias_row: [1, 128] f32 (zero-padded).
    """
    h_aug = jnp.dot(h_bf16, w_aug, preferred_element_type=jnp.float32)   # [N,128]
    a_src = h_aug[:, _SRC_COL:_SRC_COL + 1]                              # [N,1]
    a_dst = h_aug[:, _DST_COL:_DST_COL + 1]                              # [N,1]
    # e[i, j] = leaky_relu(a_dst[i] + a_src[j])   (i = target, j = source)
    e = a_dst + jnp.transpose(a_src)                                     # [N,N]
    e = jnp.maximum(e, 0.2 * e)                                          # leaky_relu(0.2)
    logits = e + mask_ref[...].astype(jnp.float32)                       # additive mask
    m = jnp.max(logits, axis=-1, keepdims=True)
    p = jnp.exp(logits - m)
    attn = p * pl.reciprocal(jnp.sum(p, axis=-1, keepdims=True), approx=True)
    # Aggregate over the full 128-wide h_aug: the extra att columns produce
    # values only in lanes >= Fout, which later zero weight rows discard.
    out = jnp.dot(attn.astype(jnp.bfloat16), h_aug.astype(jnp.bfloat16),
                  preferred_element_type=jnp.float32) + bias_row
    return out


def gae_kernel(x_ref, mask_ref, pool_ref, w_enc_ref, b_enc_ref,
               w_dec_ref, b_dec_ref, z_ref, gemb_ref, xhat_ref):
    """Fused GAE forward: GAT -> ReLU -> GAT -> Linear -> pool -> MLP decoder."""
    b_enc = b_enc_ref[...]                                               # [3,128] f32
    b_dec = b_dec_ref[...]                                               # [2,128] f32

    # --- encoder ---
    h1 = _gat_layer(x_ref[...], mask_ref, w_enc_ref[0], b_enc[0:1, :])
    h1 = jnp.maximum(h1, 0.0)
    h2 = _gat_layer(h1.astype(jnp.bfloat16), mask_ref, w_enc_ref[1], b_enc[1:2, :])
    z = jnp.dot(h2.astype(jnp.bfloat16), w_enc_ref[2],
                preferred_element_type=jnp.float32) + b_enc[2:3, :]      # [N,128]
    z_ref[...] = z
    zb = z.astype(jnp.bfloat16)

    # --- global_mean_pool (rows of pool are already 1/count normalized) ---
    gemb_ref[...] = jnp.dot(pool_ref[...], zb,
                            preferred_element_type=jnp.float32)          # [G,128]

    # --- decoder MLP (fused: z never leaves VMEM before being consumed) ---
    d1 = jnp.dot(zb, w_dec_ref[0],
                 preferred_element_type=jnp.float32) + b_dec[0:1, :]
    d1 = jnp.maximum(d1, 0.0)
    xhat_ref[...] = jnp.dot(d1.astype(jnp.bfloat16), w_dec_ref[1],
                            preferred_element_type=jnp.float32) + b_dec[1:2, :]


def _pad_to(a, shape):
    pads = [(0, t - s) for s, t in zip(a.shape, shape)]
    return jnp.pad(a, pads)


def _fold_gat_weights(w, att_src, att_dst):
    """Pack W, W@att_src^T, W@att_dst^T into one lane-dense [128,128] slab."""
    fin, fout = w.shape
    assert fin <= LANE and fout <= LANE - 2
    aug = jnp.zeros((LANE, LANE), jnp.float32)
    aug = aug.at[:fin, :fout].set(w)
    aug = aug.at[:fin, _SRC_COL].set((w @ att_src.T)[:, 0])
    aug = aug.at[:fin, _DST_COL].set((w @ att_dst.T)[:, 0])
    return aug


def gae_forward(x, edge_index, batch, edge_attr, params, num_graphs):
    """Plain-JAX glue: builds mask/pool + packed param slabs, calls the kernel."""
    del edge_attr  # GATConv(edge_dim=None) ignores edge_attr
    n = x.shape[0]
    latent_dim = params["wl"].shape[1]
    out_channels = params["wd2"].shape[1]

    # additive attention mask: 0 where edge j -> i (plus self loops), -1e30 else
    src, dst = edge_index[0], edge_index[1]
    adj = jnp.zeros((n, n), jnp.bool_).at[dst, src].set(True)
    adj = adj | jnp.eye(n, dtype=jnp.bool_)
    mask = jnp.where(adj, 0.0, _NEG_INF).astype(jnp.bfloat16)

    # normalized pooling matrix for global_mean_pool (rows padded to 8)
    g_pad = max(8, ((num_graphs + 7) // 8) * 8)
    onehot = (batch[None, :] == jnp.arange(num_graphs)[:, None]).astype(jnp.float32)
    counts = jnp.maximum(jnp.sum(onehot, axis=1, keepdims=True), 1.0)
    pool = _pad_to(onehot / counts, (g_pad, n)).astype(jnp.bfloat16)     # [G_pad, N]

    # coalesced, lane-dense bf16 weight slabs + f32 bias slabs
    w_enc = jnp.stack([
        _fold_gat_weights(params["w1"], params["as1"], params["ad1"]),
        _fold_gat_weights(params["w2"], params["as2"], params["ad2"]),
        _pad_to(params["wl"], (LANE, LANE)),
    ]).astype(jnp.bfloat16)                                              # [3,128,128]
    b_enc = jnp.stack([
        _pad_to(params["b1"][0], (LANE,)),
        _pad_to(params["b2"][0], (LANE,)),
        _pad_to(params["bl"][0], (LANE,)),
    ])                                                                   # [3,128] f32
    w_dec = jnp.stack([
        _pad_to(params["wd1"], (LANE, LANE)),
        _pad_to(params["wd2"], (LANE, LANE)),
    ]).astype(jnp.bfloat16)                                              # [2,128,128]
    b_dec = jnp.stack([
        _pad_to(params["bd1"][0], (LANE,)),
        _pad_to(params["bd2"][0], (LANE,)),
    ])                                                                   # [2,128] f32

    # feed x already in bf16 (first kernel op was a bf16 cast anyway)
    x_pad = _pad_to(x.astype(jnp.float32), (n, LANE)).astype(jnp.bfloat16)

    vmem = pl.BlockSpec(memory_space=pltpu.MemorySpace.VMEM)
    z_pad, gemb_pad, xhat_pad = pl.pallas_call(
        gae_kernel,
        out_shape=(jax.ShapeDtypeStruct((n, LANE), jnp.float32),
                   jax.ShapeDtypeStruct((g_pad, LANE), jnp.float32),
                   jax.ShapeDtypeStruct((n, LANE), jnp.float32)),
        in_specs=[vmem] * 7,
        out_specs=(vmem, vmem, vmem),
        compiler_params=pltpu.CompilerParams(
            vmem_limit_bytes=_vmem_limit_bytes()),
    )(x_pad, mask, pool, w_enc, b_enc, w_dec, b_dec)

    x_hat = xhat_pad[:, :out_channels]
    z = z_pad[:, :latent_dim]
    graph_embedding = gemb_pad[:num_graphs, :latent_dim]
    return x_hat, z, graph_embedding


def init_params(key, in_channels, hidden_dim, latent_dim, out_channels):
    ks = jax.random.split(key, 12)

    def w(k, shape, scale=0.1):
        return (scale * jax.random.normal(k, shape)).astype(jnp.float32)

    return {
        # GATConv1
        "w1": w(ks[0], (in_channels, hidden_dim)),
        "as1": w(ks[1], (1, hidden_dim)),
        "ad1": w(ks[2], (1, hidden_dim)),
        "b1": jnp.zeros((1, hidden_dim), jnp.float32),
        # GATConv2
        "w2": w(ks[3], (hidden_dim, latent_dim)),
        "as2": w(ks[4], (1, latent_dim)),
        "ad2": w(ks[5], (1, latent_dim)),
        "b2": jnp.zeros((1, latent_dim), jnp.float32),
        # encoder linear
        "wl": w(ks[6], (latent_dim, latent_dim)),
        "bl": w(ks[7], (1, latent_dim), 0.01),
        # decoder MLP
        "wd1": w(ks[8], (latent_dim, hidden_dim)),
        "bd1": w(ks[9], (1, hidden_dim), 0.01),
        "wd2": w(ks[10], (hidden_dim, out_channels)),
        "bd2": w(ks[11], (1, out_channels), 0.01),
    }


if __name__ == "__main__":
    in_channels, hidden_dim, latent_dim, out_channels = 4, 32, 16, 4
    num_nodes, num_edges, num_graphs = 16, 32, 2

    key = jax.random.PRNGKey(0)
    k_x, k_e, k_p, k_a = jax.random.split(key, 4)

    x = jax.random.normal(k_x, (num_nodes, in_channels), jnp.float32)
    edge_index = jax.random.randint(k_e, (2, num_edges), 0, num_nodes, jnp.int32)
    batch = jnp.concatenate(
        [jnp.zeros((num_nodes // 2,), jnp.int32),
         jnp.ones((num_nodes - num_nodes // 2,), jnp.int32)]
    )
    edge_attr = jax.random.normal(k_a, (num_edges, 3), jnp.float32)  # ignored (edge_dim=None)

    params = init_params(k_p, in_channels, hidden_dim, latent_dim, out_channels)

    fwd = jax.jit(functools.partial(gae_forward, num_graphs=num_graphs))
    x_hat, z, graph_embedding = fwd(x, edge_index, batch, edge_attr, params)
    jax.block_until_ready((x_hat, z, graph_embedding))

    assert x_hat.shape == (num_nodes, out_channels)
    assert z.shape == (num_nodes, latent_dim)
    assert graph_embedding.shape == (num_graphs, latent_dim)
    print("KERNEL_OK")
</pallas_src>

<mosaic_0001>
module attributes {stable_mosaic.version = 11 : i64} {
  func.func @gae_kernel(%arg0: memref<16x128xbf16, #tpu.memory_space<vmem>>, %arg1: memref<16x16xbf16, #tpu.memory_space<vmem>>, %arg2: memref<8x16xbf16, #tpu.memory_space<vmem>>, %arg3: memref<3x128x128xbf16, #tpu.memory_space<vmem>>, %arg4: memref<3x128xf32, #tpu.memory_space<vmem>>, %arg5: memref<2x128x128xbf16, #tpu.memory_space<vmem>>, %arg6: memref<2x128xf32, #tpu.memory_space<vmem>>, %arg7: memref<16x128xf32, #tpu.memory_space<vmem>>, %arg8: memref<8x128xf32, #tpu.memory_space<vmem>>, %arg9: memref<16x128xf32, #tpu.memory_space<vmem>>) attributes {dimension_semantics = [], scalar_prefetch = 0 : i64, scratch_operands = 0 : i64, tpu.core_type = #tpu.core_type<tc>} {
    %c0 = arith.constant 0 : index
    %c0_0 = arith.constant 0 : index
    %0 = vector.load %arg4[%c0, %c0_0] : memref<3x128xf32, #tpu.memory_space<vmem>>, vector<3x128xf32>
    %c0_1 = arith.constant 0 : index
    %c0_2 = arith.constant 0 : index
    %1 = vector.load %arg6[%c0_1, %c0_2] : memref<2x128xf32, #tpu.memory_space<vmem>>, vector<2x128xf32>
    %c0_3 = arith.constant 0 : index
    %c0_4 = arith.constant 0 : index
    %2 = vector.load %arg0[%c0_3, %c0_4] : memref<16x128xbf16, #tpu.memory_space<vmem>>, vector<16x128xbf16>
    %c0_5 = arith.constant 0 : index
    %c0_6 = arith.constant 0 : index
    %c0_7 = arith.constant 0 : index
    %3 = vector.load %arg3[%c0_5, %c0_6, %c0_7] : memref<3x128x128xbf16, #tpu.memory_space<vmem>>, vector<1x128x128xbf16>
    %4 = vector.shape_cast %3 : vector<1x128x128xbf16> to vector<128x128xbf16>
    %5 = vector.extract_strided_slice %0 {offsets = [0, 0], sizes = [1, 128], strides = [1, 1]} : vector<3x128xf32> to vector<1x128xf32>
    %cst = arith.constant dense<0.000000e+00> : vector<16x128xf32>
    %6 = tpu.matmul %2, %4, %cst {dimension_numbers = #tpu.dot_dimension_numbers<[1], [0], [0], [1], [0, 0, 1, 1], [], []>} : vector<16x128xbf16>, vector<128x128xbf16>, vector<16x128xf32> -> vector<16x128xf32>
    %7 = vector.extract_strided_slice %6 {offsets = [0, 126], sizes = [16, 1], strides = [1, 1]} : vector<16x128xf32> to vector<16x1xf32>
    %8 = vector.extract_strided_slice %6 {offsets = [0, 127], sizes = [16, 1], strides = [1, 1]} : vector<16x128xf32> to vector<16x1xf32>
    %9 = tpu.transpose %7, [1, 0] : vector<16x1xf32> -> vector<1x16xf32>
    %10 = vector.broadcast %8 : vector<16x1xf32> to vector<16x16xf32>
    %11 = vector.broadcast %9 : vector<1x16xf32> to vector<16x16xf32>
    %12 = arith.addf %10, %11 : vector<16x16xf32>
    %cst_8 = arith.constant 2.000000e-01 : f32
    %13 = vector.broadcast %cst_8 : f32 to vector<16x16xf32>
    %14 = arith.mulf %13, %12 : vector<16x16xf32>
    %15 = arith.maximumf %12, %14 : vector<16x16xf32>
    %c0_9 = arith.constant 0 : index
    %c0_10 = arith.constant 0 : index
    %16 = vector.load %arg1[%c0_9, %c0_10] : memref<16x16xbf16, #tpu.memory_space<vmem>>, vector<16x16xbf16>
    %17 = arith.extf %16 : vector<16x16xbf16> to vector<16x16xf32>
    %18 = arith.addf %15, %17 : vector<16x16xf32>
    %cst_11 = arith.constant dense<0xFF800000> : vector<16xf32>
    %19 = vector.multi_reduction <maximumf>, %18, %cst_11 [1] : vector<16x16xf32> to vector<16xf32>
    %20 = vector.shape_cast %19 : vector<16xf32> to vector<16x1xf32>
    %21 = vector.broadcast %20 : vector<16x1xf32> to vector<16x16xf32>
    %22 = arith.subf %18, %21 : vector<16x16xf32>
    %23 = math.exp %22 : vector<16x16xf32>
    %cst_12 = arith.constant dense<0.000000e+00> : vector<16xf32>
    %24 = vector.multi_reduction <add>, %23, %cst_12 [1] : vector<16x16xf32> to vector<16xf32>
    %25 = vector.shape_cast %24 : vector<16xf32> to vector<16x1xf32>
    %26 = tpu.reciprocal %25 {approx = true} : vector<16x1xf32> -> vector<16x1xf32>
    %27 = vector.broadcast %26 : vector<16x1xf32> to vector<16x16xf32>
    %28 = arith.mulf %23, %27 : vector<16x16xf32>
    %29 = arith.truncf %28 : vector<16x16xf32> to vector<16x16xbf16>
    %30 = arith.truncf %6 : vector<16x128xf32> to vector<16x128xbf16>
    %cst_13 = arith.constant dense<0.000000e+00> : vector<16x128xf32>
    %31 = tpu.matmul %29, %30, %cst_13 {dimension_numbers = #tpu.dot_dimension_numbers<[1], [0], [0], [1], [0, 0, 1, 1], [], []>} : vector<16x16xbf16>, vector<16x128xbf16>, vector<16x128xf32> -> vector<16x128xf32>
    %32 = vector.broadcast %5 : vector<1x128xf32> to vector<16x128xf32>
    %33 = arith.addf %31, %32 : vector<16x128xf32>
    %cst_14 = arith.constant 0.000000e+00 : f32
    %34 = vector.broadcast %cst_14 : f32 to vector<16x128xf32>
    %35 = arith.maximumf %33, %34 : vector<16x128xf32>
    %36 = arith.truncf %35 : vector<16x128xf32> to vector<16x128xbf16>
    %c1 = arith.constant 1 : index
    %c0_15 = arith.constant 0 : index
    %c0_16 = arith.constant 0 : index
    %37 = vector.load %arg3[%c1, %c0_15, %c0_16] : memref<3x128x128xbf16, #tpu.memory_space<vmem>>, vector<1x128x128xbf16>
    %38 = vector.shape_cast %37 : vector<1x128x128xbf16> to vector<128x128xbf16>
    %39 = vector.extract_strided_slice %0 {offsets = [1, 0], sizes = [1, 128], strides = [1, 1]} : vector<3x128xf32> to vector<1x128xf32>
    %cst_17 = arith.constant dense<0.000000e+00> : vector<16x128xf32>
    %40 = tpu.matmul %36, %38, %cst_17 {dimension_numbers = #tpu.dot_dimension_numbers<[1], [0], [0], [1], [0, 0, 1, 1], [], []>} : vector<16x128xbf16>, vector<128x128xbf16>, vector<16x128xf32> -> vector<16x128xf32>
    %41 = vector.extract_strided_slice %40 {offsets = [0, 126], sizes = [16, 1], strides = [1, 1]} : vector<16x128xf32> to vector<16x1xf32>
    %42 = vector.extract_strided_slice %40 {offsets = [0, 127], sizes = [16, 1], strides = [1, 1]} : vector<16x128xf32> to vector<16x1xf32>
    %43 = tpu.transpose %41, [1, 0] : vector<16x1xf32> -> vector<1x16xf32>
    %44 = vector.broadcast %42 : vector<16x1xf32> to vector<16x16xf32>
    %45 = vector.broadcast %43 : vector<1x16xf32> to vector<16x16xf32>
    %46 = arith.addf %44, %45 : vector<16x16xf32>
    %cst_18 = arith.constant 2.000000e-01 : f32
    %47 = vector.broadcast %cst_18 : f32 to vector<16x16xf32>
    %48 = arith.mulf %47, %46 : vector<16x16xf32>
    %49 = arith.maximumf %46, %48 : vector<16x16xf32>
    %c0_19 = arith.constant 0 : index
    %c0_20 = arith.constant 0 : index
    %50 = vector.load %arg1[%c0_19, %c0_20] : memref<16x16xbf16, #tpu.memory_space<vmem>>, vector<16x16xbf16>
    %51 = arith.extf %50 : vector<16x16xbf16> to vector<16x16xf32>
    %52 = arith.addf %49, %51 : vector<16x16xf32>
    %cst_21 = arith.constant dense<0xFF800000> : vector<16xf32>
    %53 = vector.multi_reduction <maximumf>, %52, %cst_21 [1] : vector<16x16xf32> to vector<16xf32>
    %54 = vector.shape_cast %53 : vector<16xf32> to vector<16x1xf32>
    %55 = vector.broadcast %54 : vector<16x1xf32> to vector<16x16xf32>
    %56 = arith.subf %52, %55 : vector<16x16xf32>
    %57 = math.exp %56 : vector<16x16xf32>
    %cst_22 = arith.constant dense<0.000000e+00> : vector<16xf32>
    %58 = vector.multi_reduction <add>, %57, %cst_22 [1] : vector<16x16xf32> to vector<16xf32>
    %59 = vector.shape_cast %58 : vector<16xf32> to vector<16x1xf32>
    %60 = tpu.reciprocal %59 {approx = true} : vector<16x1xf32> -> vector<16x1xf32>
    %61 = vector.broadcast %60 : vector<16x1xf32> to vector<16x16xf32>
    %62 = arith.mulf %57, %61 : vector<16x16xf32>
    %63 = arith.truncf %62 : vector<16x16xf32> to vector<16x16xbf16>
    %64 = arith.truncf %40 : vector<16x128xf32> to vector<16x128xbf16>
    %cst_23 = arith.constant dense<0.000000e+00> : vector<16x128xf32>
    %65 = tpu.matmul %63, %64, %cst_23 {dimension_numbers = #tpu.dot_dimension_numbers<[1], [0], [0], [1], [0, 0, 1, 1], [], []>} : vector<16x16xbf16>, vector<16x128xbf16>, vector<16x128xf32> -> vector<16x128xf32>
    %66 = vector.broadcast %39 : vector<1x128xf32> to vector<16x128xf32>
    %67 = arith.addf %65, %66 : vector<16x128xf32>
    %68 = arith.truncf %67 : vector<16x128xf32> to vector<16x128xbf16>
    %c2 = arith.constant 2 : index
    %c0_24 = arith.constant 0 : index
    %c0_25 = arith.constant 0 : index
    %69 = vector.load %arg3[%c2, %c0_24, %c0_25] : memref<3x128x128xbf16, #tpu.memory_space<vmem>>, vector<1x128x128xbf16>
    %70 = vector.shape_cast %69 : vector<1x128x128xbf16> to vector<128x128xbf16>
    %cst_26 = arith.constant dense<0.000000e+00> : vector<16x128xf32>
    %71 = tpu.matmul %68, %70, %cst_26 {dimension_numbers = #tpu.dot_dimension_numbers<[1], [0], [0], [1], [0, 0, 1, 1], [], []>} : vector<16x128xbf16>, vector<128x128xbf16>, vector<16x128xf32> -> vector<16x128xf32>
    %72 = vector.extract_strided_slice %0 {offsets = [2, 0], sizes = [1, 128], strides = [1, 1]} : vector<3x128xf32> to vector<1x128xf32>
    %73 = vector.broadcast %72 : vector<1x128xf32> to vector<16x128xf32>
    %74 = arith.addf %71, %73 : vector<16x128xf32>
    %c0_27 = arith.constant 0 : index
    %c0_28 = arith.constant 0 : index
    %75 = vector.load %arg7[%c0_27, %c0_28] : memref<16x128xf32, #tpu.memory_space<vmem>>, vector<16x128xf32>
    tpu.vector_store %arg7[%c0_27, %c0_28], %74 {strides = array<i32>} : memref<16x128xf32, #tpu.memory_space<vmem>>, vector<16x128xf32>,
    %76 = arith.truncf %74 : vector<16x128xf32> to vector<16x128xbf16>
    %c0_29 = arith.constant 0 : index
    %c0_30 = arith.constant 0 : index
    %77 = vector.load %arg2[%c0_29, %c0_30] : memref<8x16xbf16, #tpu.memory_space<vmem>>, vector<8x16xbf16>
    %cst_31 = arith.constant dense<0.000000e+00> : vector<8x128xf32>
    %78 = tpu.matmul %77, %76, %cst_31 {dimension_numbers = #tpu.dot_dimension_numbers<[1], [0], [0], [1], [0, 0, 1, 1], [], []>} : vector<8x16xbf16>, vector<16x128xbf16>, vector<8x128xf32> -> vector<8x128xf32>
    %c0_32 = arith.constant 0 : index
    %c0_33 = arith.constant 0 : index
    %79 = vector.load %arg8[%c0_32, %c0_33] : memref<8x128xf32, #tpu.memory_space<vmem>>, vector<8x128xf32>
    tpu.vector_store %arg8[%c0_32, %c0_33], %78 {strides = array<i32>} : memref<8x128xf32, #tpu.memory_space<vmem>>, vector<8x128xf32>,
    %c0_34 = arith.constant 0 : index
    %c0_35 = arith.constant 0 : index
    %c0_36 = arith.constant 0 : index
    %80 = vector.load %arg5[%c0_34, %c0_35, %c0_36] : memref<2x128x128xbf16, #tpu.memory_space<vmem>>, vector<1x128x128xbf16>
    %81 = vector.shape_cast %80 : vector<1x128x128xbf16> to vector<128x128xbf16>
    %cst_37 = arith.constant dense<0.000000e+00> : vector<16x128xf32>
    %82 = tpu.matmul %76, %81, %cst_37 {dimension_numbers = #tpu.dot_dimension_numbers<[1], [0], [0], [1], [0, 0, 1, 1], [], []>} : vector<16x128xbf16>, vector<128x128xbf16>, vector<16x128xf32> -> vector<16x128xf32>
    %83 = vector.extract_strided_slice %1 {offsets = [0, 0], sizes = [1, 128], strides = [1, 1]} : vector<2x128xf32> to vector<1x128xf32>
    %84 = vector.broadcast %83 : vector<1x128xf32> to vector<16x128xf32>
    %85 = arith.addf %82, %84 : vector<16x128xf32>
    %cst_38 = arith.constant 0.000000e+00 : f32
    %86 = vector.broadcast %cst_38 : f32 to vector<16x128xf32>
    %87 = arith.maximumf %85, %86 : vector<16x128xf32>
    %88 = arith.truncf %87 : vector<16x128xf32> to vector<16x128xbf16>
    %c1_39 = arith.constant 1 : index
    %c0_40 = arith.constant 0 : index
    %c0_41 = arith.constant 0 : index
    %89 = vector.load %arg5[%c1_39, %c0_40, %c0_41] : memref<2x128x128xbf16, #tpu.memory_space<vmem>>, vector<1x128x128xbf16>
    %90 = vector.shape_cast %89 : vector<1x128x128xbf16> to vector<128x128xbf16>
    %cst_42 = arith.constant dense<0.000000e+00> : vector<16x128xf32>
    %91 = tpu.matmul %88, %90, %cst_42 {dimension_numbers = #tpu.dot_dimension_numbers<[1], [0], [0], [1], [0, 0, 1, 1], [], []>} : vector<16x128xbf16>, vector<128x128xbf16>, vector<16x128xf32> -> vector<16x128xf32>
    %92 = vector.extract_strided_slice %1 {offsets = [1, 0], sizes = [1, 128], strides = [1, 1]} : vector<2x128xf32> to vector<1x128xf32>
    %93 = vector.broadcast %92 : vector<1x128xf32> to vector<16x128xf32>
    %94 = arith.addf %91, %93 : vector<16x128xf32>
    %c0_43 = arith.constant 0 : index
    %c0_44 = arith.constant 0 : index
    %95 = vector.load %arg9[%c0_43, %c0_44] : memref<16x128xf32, #tpu.memory_space<vmem>>, vector<16x128xf32>
    tpu.vector_store %arg9[%c0_43, %c0_44], %94 {strides = array<i32>} : memref<16x128xf32, #tpu.memory_space<vmem>>, vector<16x128xf32>,
    return
  }
}

</mosaic_0001>

<bundles_post_ra>
// kernel: gae_forward.1
= control target key start
LH: loop header
LB: loop body
LE: loop exit
PB: predicated region body
PF: predicated region fallthrough
CT: control target
= control target key end

     0   :  { %v1286_v1 = vmov 0.0   ;;  %vm1287_vm0 = vmmov 0   ;;  %v1288_v3 = vmov 127   ;;  %s1605_s0 = inlined_call_operand.vmem [shape: bf16[16,128], index: 0, kind: input, shape index: {}]   ;;  %s1606_s1 = inlined_call_operand.vmem [shape: bf16[16,16], index: 1, kind: input, shape index: {}]   ;;  %s1607_s2 = inlined_call_operand.vmem [shape: bf16[8,16], index: 2, kind: input, shape index: {}]   ;;  %s1608_s3 = inlined_call_operand.vmem [shape: bf16[3,128,128], index: 3, kind: input, shape index: {}]   ;;  %s1609_s4 = inlined_call_operand.vmem [shape: f32[3,128], index: 4, kind: input, shape index: {}]   ;;  %s1610_s5 = inlined_call_operand.vmem [shape: bf16[2,128,128], index: 5, kind: input, shape index: {}]   ;;  %s1611_s6 = inlined_call_operand.vmem [shape: f32[2,128], index: 6, kind: input, shape index: {}]   ;;  %s1612_s7 = inlined_call_operand.hbm [shape: f32[16,128], index: 7, kind: output, shape index: {0}]   ;;  %s1613_s8 = inlined_call_operand.vmem [shape: f32[8,128], index: 8, kind: output, shape index: {1}]   ;;  %s1614_s9 = inlined_call_operand.vmem [shape: f32[16,128], index: 9, kind: output, shape index: {2}]  }
   0x1   :  { %v1205_v0 = vld [vmem:[%s1608_s3] sm:$0xff]   ;;  %1078 = vmatprep.subr.bf16.mxu0 %v1286_v1  ;;  %1104 = vmatprep.subr.bf16.mxu1 %v1286_v1  ;;  %v1206_v2 = vld [vmem:[%s1608_s3 + $0x8] sm:$0xff]   ;;  %v1207_v4 = vld [vmem:[%s1608_s3 + $0x10] sm:$0xff]  }
   0x2   :  { %1079 = vmatpush3.bf16.msra.mxu0 %v1205_v0  ;;  %1094 = vmatprep.mubr.msk.bf16.mxu0 %vm1287_vm0, %v1286_v1  ;;  %v1208_v5 = vld [vmem:[%s1608_s3 + $0x18] sm:$0xff]   ;;  %v1209_v6 = vld [vmem:[%s1608_s3 + $0x20] sm:$0xff]   ;;  %v1210_v7 = vld [vmem:[%s1608_s3 + $0x28] sm:$0xff]  }
   0x3   :  { %1080 = vmatprep.subr.bf16.mxu0 %v1286_v1  ;;  %1203 = vset.pattern.permute.xlu1 %v1288_v3  ;;  %v1211_v8 = vld [vmem:[%s1608_s3 + $0x30] sm:$0xff]   ;;  %v1212_v9 = vld [vmem:[%s1608_s3 + $0x38] sm:$0xff]   ;;  %v1213_v10 = vld [vmem:[%s1605_s0] sm:$0xff]  }
   0x4   :  { %1120 = vmatprep.mubr.msk.bf16.mxu1 %vm1287_vm0, %v1286_v1 }
   0x6   :  { %1081 = vmatpush3.bf16.msra.mxu0 %v1206_v2 }
   0x7   :  { %1082 = vmatprep.subr.bf16.mxu0 %v1286_v1 }
   0xa   :  { %1083 = vmatpush3.bf16.msra.mxu0 %v1207_v4 }
   0xb   :  { %1084 = vmatprep.subr.bf16.mxu0 %v1286_v1 }
   0xe   :  { %1085 = vmatpush3.bf16.msra.mxu0 %v1208_v5 }
   0xf   :  { %1086 = vmatprep.subr.bf16.mxu0 %v1286_v1 }
  0x12   :  { %1087 = vmatpush3.bf16.msra.mxu0 %v1209_v6 }
  0x13   :  { %1088 = vmatprep.subr.bf16.mxu0 %v1286_v1 }
  0x16   :  { %1089 = vmatpush3.bf16.msra.mxu0 %v1210_v7 }
  0x17   :  { %1090 = vmatprep.subr.bf16.mxu0 %v1286_v1 }
  0x1a   :  { %1091 = vmatpush3.bf16.msra.mxu0 %v1211_v8 }
  0x1b   :  { %1092 = vmatprep.subr.bf16.mxu0 %v1286_v1 }
  0x1e   :  { %1093 = vmatpush3.bf16.msra.mxu0 %v1212_v9 }
  0x1f   :  { %15 = vsyncpa [#allocation3], 0  ;;  %1098 = vmatprep.subr.bf16.mxu0 %v1286_v1  ;;  %s1289_s27 = smov 2   ;;  %v194_v18 = vlaneseq  ;;  %v1398_v25 = vld [vmem:[%s1606_s1] sm:$0xff]   ;;  %vm210_vm1 = vcmask 130048   ;;  %v1215_v49 = vld [vmem:[%s1608_s3 + $0x48] sm:$0xff]  }
  0x20   :  { %v1026_v30 = vunpack.c.h.bf16 %v1398_v25  ;;  %v1025_v31 = vunpack.c.l.bf16 %v1398_v25  ;;  %v1214_v48 = vld [vmem:[%s1608_s3 + $0x40] sm:$0xff]   ;;  %v1216_v50 = vld [vmem:[%s1608_s3 + $0x50] sm:$0xff]   ;;  %v1217_v51 = vld [vmem:[%s1608_s3 + $0x58] sm:$0xff]  }
  0x21   :  { %1095 = vmatmul.mubr.bf16.vlgmr.msra.gmra.mrb[0].mxu0 %v1213_v10  ;;  %v1389_v19 = vshrl.u32 %v194_v18, 7  ;;  %1105 = vmatpush3.bf16.msra.mxu1 %v1214_v48  ;;  %v1218_v52 = vld [vmem:[%s1608_s3 + $0x60] sm:$0xff]   ;;  %v1219_v53 = vld [vmem:[%s1608_s3 + $0x68] sm:$0xff]   ;;  %v1220_v61 = vld [vmem:[%s1608_s3 + $0x70] sm:$0xff]  }
  0x22   :  { %1100 = vmatprep.mubr.msk.bf16.mxu0 %vm1287_vm0, %v1286_v1  ;;  %1106 = vmatprep.subr.bf16.mxu1 %v1286_v1  ;;  %v1221_v62 = vld [vmem:[%s1608_s3 + $0x78] sm:$0xff]   ;;  %v1448_v63 = vld [vmem:[%s1609_s4] sm:$0x7] }
  0x23   :  { %v1392_v21 = vsub.s32 0, %v1389_v19  ;;  %v1226_v48 = vld [vmem:[%s1608_s3 + $0xa0] sm:$0xff]  }
  0x25   :  { %1107 = vmatpush3.bf16.msra.mxu1 %v1215_v49  ;;  %v238_v0 = vrot.slane %v1448_v63, %v1392_v21  ;;  %v1227_v49 = vld [vmem:[%s1608_s3 + $0xa8] sm:$0xff]  }
  0x26   :  { %1108 = vmatprep.subr.bf16.mxu1 %v1286_v1 }
  0x29   :  { %1109 = vmatpush3.bf16.msra.mxu1 %v1216_v50 }
  0x2a   :  { %1110 = vmatprep.subr.bf16.mxu1 %v1286_v1 }
  0x2d   :  { %1111 = vmatpush3.bf16.msra.mxu1 %v1217_v51 }
  0x2e   :  { %1112 = vmatprep.subr.bf16.mxu1 %v1286_v1 }
  0x31   :  { %1113 = vmatpush3.bf16.msra.mxu1 %v1218_v52 }
  0x32   :  { %1114 = vmatprep.subr.bf16.mxu1 %v1286_v1 }
  0x35   :  { %1115 = vmatpush3.bf16.msra.mxu1 %v1219_v53 }
  0x36   :  { %1116 = vmatprep.subr.bf16.mxu1 %v1286_v1 }
  0x39   :  { %1117 = vmatpush3.bf16.msra.mxu1 %v1220_v61 }
  0x3a   :  { %1118 = vmatprep.subr.bf16.mxu1 %v1286_v1 }
  0x3d   :  { %1119 = vmatpush3.bf16.msra.mxu1 %v1221_v62 }
  0x3e   :  { %1130 = vmatprep.subr.bf16.mxu1 %v1286_v1 }
  0xf4   :  { %v139_v11 = vpop.f32.mrb[0].mxu0 }
  0xf5   :  { %187 = vperm.xlu1 %1203, %v139_v11   ;;  %148 = vrot.lane.b32.xlu0 %v139_v11, %s1289_s27  ;;  %v1096_v12 = vpop.f32.mrb[1].mxu0 }
  0xf6   :  { %v142_v13 = vpop.f32.mrb[2].mxu0 }
  0xf7   :  { %v234_v14 = vpack.c.bf16 %v142_v13, %v139_v11  ;;  %v1097_v15 = vpop.f32.mrb[3].mxu0 }
  0xf9   :  { %191 = vperm.xlu1 %1203, %v142_v13   ;;  %150 = vrot.lane.b32.xlu0 %v142_v13, %s1289_s27 }
  0xfa   :  { %1099 = vmatpush3.bf16.msra.mxu0 %v234_v14 }
  0xfb   :  { %1124 = vmatprep.subr.bf16.mxu0 %v1286_v1 }
 0x167   :  { %v149_v16 = vpop.permute.xlu0 %148 }
 0x168   :  { %154 = vxpose.xlu0.b32.start [1/2] (short) (narrow) %v149_v16, 8 }
 0x16b   :  { %v151_v17 = vpop.permute.xlu0 %150 }
 0x16c   :  { %155 = vxpose.xlu0.b32.end [2/2] (short) (narrow) %v151_v17, 8 }
 0x174   :  { %v188_v20 = vpop.permute.xlu1 %187 }
 0x178   :  { %v192_v24 = vpop.permute.xlu1 %191 }
 0x195   :  { %1204 = vset.pattern.permute.xlu0 %v1288_v3 }
 0x1e8   :  { %v170_v22 = vpop.trf.xlu0 }
 0x1e9   :  { %v197_v23 = vrot.slane %v170_v22, %v1392_v21 }
 0x1eb   :  { %v198_v26 = vadd.f32 %v197_v23, %v188_v20  ;;  %v199_v27 = vadd.f32 %v197_v23, %v192_v24 }
 0x1ed   :  { %v200_v28 = vmul.f32 0.2, %v198_v26  ;;  %v201_v29 = vmul.f32 0.2, %v199_v27 }
 0x1ef   :  { %v203_v32 = vmax.f32 %v199_v27, %v201_v29  ;;  %v202_v33 = vmax.f32 %v198_v26, %v200_v28 }
 0x1f1   :  { %v209_v34 = vadd.f32 %v1026_v30, %v203_v32  ;;  %v208_v35 = vadd.f32 %v1025_v31, %v202_v33 }
 0x1f3   :  { %v214_v36 = vsel %vm210_vm1, %v209_v34, -inf  ;;  %v211_v37 = vsel %vm210_vm1, %v208_v35, -inf }
 0x1f4   :  { %215 = vmax.xlane.f32.xlu0 %v214_v36  ;;  %212 = vmax.xlane.f32.xlu1 %v211_v37 }
 0x281   :  { %v216_v38 = vpop.xlane.xlu0 %215  ;;  %v213_v39 = vpop.xlane.xlu1 %212 }
 0x282   :  { %v218_v40 = vsub.f32 %v209_v34, %v216_v38  ;;  %v217_v41 = vsub.f32 %v208_v35, %v213_v39 }
 0x284   :  { %v219_v42 = vmul.f32 1.442695, %v217_v41  ;;  %v221_v43 = vmul.f32 1.442695, %v218_v40 }
 0x286   :  { %1246 = vpow2.f32 %v219_v42 }
 0x287   :  { %1248 = vpow2.f32 %v221_v43 }
 0x290   :  { %v1247_v44 = vpop.eup %1246 }
 0x291   :  { %v223_v45 = vsel %vm210_vm1, %v1247_v44, 0.0  ;;  %v1249_v46 = vpop.eup %1248 }
 0x292   :  { %224 = vadd.xlane.f32.xlu1 %v223_v45  ;;  %v226_v47 = vsel %vm210_vm1, %v1249_v46, 0.0  ;;  %v1223_v45 = vld [vmem:[%s1608_s3 + $0x88] sm:$0xff]  }
 0x296   :  { %227 = vadd.xlane.f32.xlu1 %v226_v47  ;;  %v1225_v47 = vld [vmem:[%s1608_s3 + $0x98] sm:$0xff]  }
 0x31f   :  { %v225_v54 = vpop.xlane.xlu1 %224 }
 0x320   :  { %1250 = vrcp.f32 %v225_v54 }
 0x323   :  { %v228_v55 = vpop.xlane.xlu1 %227 }
 0x324   :  { %1252 = vrcp.f32 %v228_v55 }
 0x32a   :  { %v1251_v56 = vpop.eup %1250 }
 0x32b   :  { %v231_v58 = vmul.f32 %v1251_v56, %v1247_v44 }
 0x32e   :  { %v1253_v57 = vpop.eup %1252 }
 0x32f   :  { %v232_v59 = vmul.f32 %v1253_v57, %v1249_v46  ;;  %v1224_v46 = vld [vmem:[%s1608_s3 + $0x90] sm:$0xff]  }
 0x330   :  { %v1228_v57 = vld [vmem:[%s1608_s3 + $0xb0] sm:$0xff]  }
 0x331   :  { %v233_v60 = vpack.c.bf16 %v232_v59, %v231_v58  ;;  %v1229_v58 = vld [vmem:[%s1608_s3 + $0xb8] sm:$0xff]   ;;  %v478_v59 = vsub.s32 1, %v1389_v19 }
 0x333   :  { %1101 = vmatmul.mubr.msk.bf16.vlgmr.msra.gmra.mrb[4].mxu0 %vm210_vm1, %v233_v60  ;;  %v479_v60 = vrot.slane %v1448_v63, %v478_v59 }
 0x334   :  { %1126 = vmatprep.mubr.msk.bf16.mxu0 %vm1287_vm0, %v1286_v1 }
 0x406   :  { %v276_v2 = vpop.f32.mrb[4].mxu0 }
 0x407   :  { %v277_v3 = vadd.f32 %v276_v2, %v238_v0  ;;  %v1102_v4 = vpop.f32.mrb[5].mxu0 }
 0x408   :  { %v279_v5 = vpop.f32.mrb[6].mxu0 }
 0x409   :  { %v280_v6 = vadd.f32 %v279_v5, %v238_v0  ;;  %v1103_v7 = vpop.f32.mrb[7].mxu0  ;;  %v283_v8 = vmax.f32 %v277_v3, 0.0 }
 0x40b   :  { %v284_v9 = vmax.f32 %v280_v6, 0.0  ;;  %v544_v6 = vsub.s32 2, %v1389_v19 }
 0x40d   :  { %v285_v10 = vpack.c.bf16 %v284_v9, %v283_v8  ;;  %v545_v7 = vrot.slane %v1448_v63, %v544_v6  ;;  %v1231_v63 = vld [vmem:[%s1610_s5 + $0x8] sm:$0xff]  }
 0x40f   :  { %1121 = vmatmul.mubr.bf16.vlgmr.msra.gmra.mrb[0].mxu1 %v285_v10 }
 0x410   :  { %1146 = vmatprep.mubr.msk.bf16.mxu1 %vm1287_vm0, %v1286_v1 }
 0x4e2   :  { %v385_v11 = vpop.f32.mrb[0].mxu1 }
 0x4e3   :  { %394 = vrot.lane.b32.xlu1 %v385_v11, %s1289_s27  ;;  %v1122_v12 = vpop.f32.mrb[1].mxu1 }
 0x4e4   :  { %v388_v13 = vpop.f32.mrb[2].mxu1 }
 0x4e5   :  { %v475_v14 = vpack.c.bf16 %v388_v13, %v385_v11  ;;  %v1123_v15 = vpop.f32.mrb[3].mxu1 }
 0x4e6   :  { %v638_v15 = vld [vmem:[%s1607_s2] sm:$0xf] }
 0x4e7   :  { %396 = vrot.lane.b32.xlu1 %v388_v13, %s1289_s27  ;;  %1125 = vmatpush3.bf16.msra.mxu0 %v475_v14 }
 0x4e8   :  { %1150 = vmatprep.subr.bf16.mxu0 %v1286_v1 }
 0x4eb   :  { %433 = vperm.xlu1 %1203, %v385_v11  }
 0x4ef   :  { %437 = vperm.xlu1 %1203, %v388_v13  }
 0x555   :  { %v395_v16 = vpop.permute.xlu1 %394 }
 0x556   :  { %400 = vxpose.xlu1.b32.start [1/2] (short) (narrow) %v395_v16, 8  ;;  %v1230_v16 = vld [vmem:[%s1610_s5] sm:$0xff]  }
 0x559   :  { %v397_v17 = vpop.permute.xlu1 %396 }
 0x55a   :  { %401 = vxpose.xlu1.b32.end [2/2] (short) (narrow) %v397_v17, 8  ;;  %v1232_v17 = vld [vmem:[%s1610_s5 + $0x10] sm:$0xff]  }
 0x56a   :  { %v434_v18 = vpop.permute.xlu1 %433 }
 0x56e   :  { %v438_v20 = vpop.permute.xlu1 %437 }
 0x5d6   :  { %v416_v22 = vpop.trf.xlu1 }
 0x5d7   :  { %v443_v23 = vrot.slane %v416_v22, %v1392_v21  ;;  %v1235_v22 = vld [vmem:[%s1610_s5 + $0x28] sm:$0xff]  }
 0x5d9   :  { %v444_v24 = vadd.f32 %v443_v23, %v434_v18  ;;  %v445_v26 = vadd.f32 %v443_v23, %v438_v20  ;;  %v1233_v18 = vld [vmem:[%s1610_s5 + $0x18] sm:$0xff]   ;;  %v1234_v20 = vld [vmem:[%s1610_s5 + $0x20] sm:$0xff]   ;;  %v1236_v23 = vld [vmem:[%s1610_s5 + $0x30] sm:$0xff]  }
 0x5db   :  { %v446_v27 = vmul.f32 0.2, %v444_v24  ;;  %v447_v28 = vmul.f32 0.2, %v445_v26 }
 0x5dd   :  { %v448_v29 = vmax.f32 %v444_v24, %v446_v27  ;;  %v449_v32 = vmax.f32 %v445_v26, %v447_v28  ;;  %v1237_v24 = vld [vmem:[%s1610_s5 + $0x38] sm:$0xff]   ;;  %v1238_v26 = vld [vmem:[%s1610_s5 + $0x40] sm:$0xff]   ;;  %v1239_v27 = vld [vmem:[%s1610_s5 + $0x48] sm:$0xff]  }
 0x5de   :  { %v1240_v28 = vld [vmem:[%s1610_s5 + $0x50] sm:$0xff]  }
 0x5df   :  { %v450_v33 = vadd.f32 %v1025_v31, %v448_v29  ;;  %v451_v35 = vadd.f32 %v1026_v30, %v449_v32  ;;  %v1222_v30 = vld [vmem:[%s1608_s3 + $0x80] sm:$0xff]   ;;  %v1241_v29 = vld [vmem:[%s1610_s5 + $0x58] sm:$0xff]  }
 0x5e0   :  { %1131 = vmatpush3.bf16.msra.mxu1 %v1222_v30  ;;  %v1242_v32 = vld [vmem:[%s1610_s5 + $0x60] sm:$0xff]  }
 0x5e1   :  { %v452_v34 = vsel %vm210_vm1, %v450_v33, -inf  ;;  %v455_v36 = vsel %vm210_vm1, %v451_v35, -inf  ;;  %1132 = vmatprep.subr.bf16.mxu1 %v1286_v1 }
 0x5e2   :  { %453 = vmax.xlane.f32.xlu0 %v452_v34  ;;  %v1244_v34 = vld [vmem:[%s1610_s5 + $0x70] sm:$0xff]  }
 0x5e4   :  { %1133 = vmatpush3.bf16.msra.mxu1 %v1223_v45 }
 0x5e5   :  { %1134 = vmatprep.subr.bf16.mxu1 %v1286_v1 }
 0x5e6   :  { %456 = vmax.xlane.f32.xlu0 %v455_v36 }
 0x5e8   :  { %1135 = vmatpush3.bf16.msra.mxu1 %v1224_v46 }
 0x5e9   :  { %1136 = vmatprep.subr.bf16.mxu1 %v1286_v1 }
 0x5ec   :  { %1137 = vmatpush3.bf16.msra.mxu1 %v1225_v47 }
 0x5ed   :  { %1138 = vmatprep.subr.bf16.mxu1 %v1286_v1 }
 0x5f0   :  { %1139 = vmatpush3.bf16.msra.mxu1 %v1226_v48 }
 0x5f1   :  { %1140 = vmatprep.subr.bf16.mxu1 %v1286_v1 }
 0x5f4   :  { %1141 = vmatpush3.bf16.msra.mxu1 %v1227_v49 }
 0x5f5   :  { %1142 = vmatprep.subr.bf16.mxu1 %v1286_v1 }
 0x5f8   :  { %1143 = vmatpush3.bf16.msra.mxu1 %v1228_v57 }
 0x5f9   :  { %1144 = vmatprep.subr.bf16.mxu1 %v1286_v1 }
 0x5fc   :  { %1145 = vmatpush3.bf16.msra.mxu1 %v1229_v58 }
 0x5fd   :  { %1176 = vmatprep.subr.bf16.mxu1 %v1286_v1 }
 0x66f   :  { %v454_v37 = vpop.xlane.xlu0 %453 }
 0x670   :  { %v458_v38 = vsub.f32 %v450_v33, %v454_v37  ;;  %v1243_v33 = vld [vmem:[%s1610_s5 + $0x68] sm:$0xff]  }
 0x672   :  { %v460_v39 = vmul.f32 1.442695, %v458_v38 }
 0x673   :  { %v457_v40 = vpop.xlane.xlu0 %456 }
 0x674   :  { %1254 = vpow2.f32 %v460_v39  ;;  %v459_v41 = vsub.f32 %v451_v35, %v457_v40  ;;  %v1245_v35 = vld [vmem:[%s1610_s5 + $0x78] sm:$0xff]   ;;  %v32_v40 = vld [vmem:[%s1611_s6] sm:$0x3]  ;;  %s1290_s5 = smov [#allocation2]  }
 0x676   :  { %v462_v42 = vmul.f32 1.442695, %v459_v41  ;;  %v702_v41 = vrot.slane %v32_v40, %v1392_v21 }
 0x678   :  { %1256 = vpow2.f32 %v462_v42 }
 0x67e   :  { %v1255_v43 = vpop.eup %1254 }
 0x67f   :  { %v464_v31 = vsel %vm210_vm1, %v1255_v43, 0.0 }
 0x680   :  { %465 = vadd.xlane.f32.xlu0 %v464_v31 }
 0x682   :  { %v1257_v44 = vpop.eup %1256 }
 0x683   :  { %v467_v25 = vsel %vm210_vm1, %v1257_v44, 0.0 }
 0x684   :  { %468 = vadd.xlane.f32.xlu0 %v467_v25 }
 0x70d   :  { %v466_v50 = vpop.xlane.xlu0 %465 }
 0x70e   :  { %1258 = vrcp.f32 %v466_v50 }
 0x711   :  { %v469_v51 = vpop.xlane.xlu0 %468 }
 0x712   :  { %1260 = vrcp.f32 %v469_v51 }
 0x718   :  { %v1259_v52 = vpop.eup %1258 }
 0x719   :  { %v472_v54 = vmul.f32 %v1259_v52, %v1255_v43 }
 0x71c   :  { %v1261_v53 = vpop.eup %1260 }
 0x71d   :  { %v473_v55 = vmul.f32 %v1261_v53, %v1257_v44 }
 0x71f   :  { %v474_v56 = vpack.c.bf16 %v473_v55, %v472_v54 }
 0x721   :  { %1127 = vmatmul.mubr.msk.bf16.vlgmr.msra.gmra.mrb[8].mxu0 %vm210_vm1, %v474_v56 }
 0x722   :  { %1152 = vmatprep.mubr.msk.bf16.mxu0 %vm1287_vm0, %v1286_v1 }
 0x7f4   :  { %v517_v61 = vpop.f32.mrb[8].mxu0 }
 0x7f5   :  { %v1128_v62 = vpop.f32.mrb[9].mxu0  ;;  %v518_v2 = vadd.f32 %v517_v61, %v479_v60 }
 0x7f6   :  { %v520_v0 = vpop.f32.mrb[10].mxu0 }
 0x7f7   :  { %v521_v3 = vadd.f32 %v520_v0, %v479_v60  ;;  %v1129_v4 = vpop.f32.mrb[11].mxu0 }
 0x7f9   :  { %v524_v5 = vpack.c.bf16 %v521_v3, %v518_v2 }
 0x7fb   :  { %1147 = vmatmul.mubr.bf16.vlgmr.msra.gmra.mrb[4].mxu1 %v524_v5 }
 0x7fc   :  { %1192 = vmatprep.mubr.msk.bf16.mxu1 %vm1287_vm0, %v1286_v1  ;;  %1177 = vmatpush3.bf16.msra.mxu1 %v1238_v26 }
 0x7fd   :  { %1178 = vmatprep.subr.bf16.mxu1 %v1286_v1 }
 0x800   :  { %1179 = vmatpush3.bf16.msra.mxu1 %v1239_v27 }
 0x801   :  { %1180 = vmatprep.subr.bf16.mxu1 %v1286_v1 }
 0x804   :  { %1181 = vmatpush3.bf16.msra.mxu1 %v1240_v28 }
 0x805   :  { %1182 = vmatprep.subr.bf16.mxu1 %v1286_v1 }
 0x808   :  { %1183 = vmatpush3.bf16.msra.mxu1 %v1241_v29 }
 0x809   :  { %1184 = vmatprep.subr.bf16.mxu1 %v1286_v1 }
 0x80c   :  { %1185 = vmatpush3.bf16.msra.mxu1 %v1242_v32 }
 0x80d   :  { %1186 = vmatprep.subr.bf16.mxu1 %v1286_v1 }
 0x810   :  { %1187 = vmatpush3.bf16.msra.mxu1 %v1243_v33 }
 0x811   :  { %1188 = vmatprep.subr.bf16.mxu1 %v1286_v1 }
 0x814   :  { %1189 = vmatpush3.bf16.msra.mxu1 %v1244_v34 }
 0x815   :  { %1190 = vmatprep.subr.bf16.mxu1 %v1286_v1 }
 0x818   :  { %1191 = vmatpush3.bf16.msra.mxu1 %v1245_v35 }
 0x8ce   :  { %v628_v8 = vpop.f32.mrb[4].mxu1 }
 0x8cf   :  { %v629_v9 = vadd.f32 %v628_v8, %v545_v7  ;;  %v1148_v10 = vpop.f32.mrb[5].mxu1 }
 0x8d0   :  { %v631_v11 = vpop.f32.mrb[6].mxu1 }
 0x8d1   :  { %635 = vst [vmem:[#allocation2] sm:$0xff] %v629_v9  ;;  %v632_v12 = vadd.f32 %v631_v11, %v545_v7  ;;  %v1149_v13 = vpop.f32.mrb[7].mxu1 }
 0x8d3   :  { %636 = vst [vmem:[#allocation2 + $0x8] sm:$0xff] %v632_v12  ;;  %v637_v14 = vpack.c.bf16 %v632_v12, %v629_v9 }
 0x8d5   :  { %1151 = vmatpush3.bf16.msra.mxu0 %v637_v14 }
 0x8d6   :  { %1156 = vmatprep.subr.bf16.mxu0 %v1286_v1 }
 0x8d8   :  { %1153 = vmatmul.mubr.msk.bf16.vlgmr.msra.gmra.mrb[12].mxu0 %vm210_vm1, %v638_v15 }
 0x8d9   :  { %1157 = vmatpush3.bf16.msra.mxu0 %v1230_v16  ;;  %1172 = vmatprep.mubr.msk.bf16.mxu0 %vm1287_vm0, %v1286_v1 }
 0x8da   :  { %1158 = vmatprep.subr.bf16.mxu0 %v1286_v1 }
 0x8dd   :  { %1159 = vmatpush3.bf16.msra.mxu0 %v1231_v63 }
 0x8de   :  { %1160 = vmatprep.subr.bf16.mxu0 %v1286_v1 }
 0x8e1   :  { %1161 = vmatpush3.bf16.msra.mxu0 %v1232_v17 }
 0x8e2   :  { %1162 = vmatprep.subr.bf16.mxu0 %v1286_v1 }
 0x8e5   :  { %1163 = vmatpush3.bf16.msra.mxu0 %v1233_v18 }
 0x8e6   :  { %1164 = vmatprep.subr.bf16.mxu0 %v1286_v1 }
 0x8e9   :  { %1165 = vmatpush3.bf16.msra.mxu0 %v1234_v20 }
 0x8ea   :  { %1166 = vmatprep.subr.bf16.mxu0 %v1286_v1 }
 0x8ed   :  { %1167 = vmatpush3.bf16.msra.mxu0 %v1235_v22 }
 0x8ee   :  { %1168 = vmatprep.subr.bf16.mxu0 %v1286_v1 }
 0x8f1   :  { %1169 = vmatpush3.bf16.msra.mxu0 %v1236_v23 }
 0x8f2   :  { %1170 = vmatprep.subr.bf16.mxu0 %v1286_v1 }
 0x8f5   :  { %1171 = vmatpush3.bf16.msra.mxu0 %v1237_v24 }
 0x8f8   :  { %1173 = vmatmul.mubr.bf16.vlgmr.msra.gmra.mrb[16].mxu0 %v637_v14 }
 0x9ab   :  { %v676_v36 = vpop.f32.mrb[12].mxu0 }
 0x9ac   :  { %682 = vst [vmem:[%s1613_s8] sm:$0xff] %v676_v36  ;;  %v1154_v37 = vpop.f32.mrb[13].mxu0  ;;  %s912_s8 = sshll.u32 %s1290_s5, 4  ;;  %s913_s8 = int_to_ptr.vmem [resolvable:$true] %s912_s8 }
 0x9ad   :  { %v679_v38 = vpop.f32.mrb[14].mxu0  ;;  %s1262_s26 = scalar_lea.vmem %s913_s8, 256  ;;  %p1267_p1 = scmp.lt.s32.totalorder %s913_s8, %s913_s8 }
 0x9ae   :  { %v1155_v39 = vpop.f32.mrb[15].mxu0  ;;  %p1263_p0 = scmp.ne.s32.totalorder %s913_s8, %s1262_s26  ;;  %p1268_p2 = scmp.lt.s32.totalorder %s1262_s26, %s1262_s26 }
 0x9b0   :  { %p1269_p3 = por %p1268_p2, %p1267_p1 }
 0x9b2   :  { %p1270_p4 = pnand %p1269_p3, %p1263_p0 }
 0x9cb   :  { %v785_v1 = vpop.f32.mrb[16].mxu0 }
 0x9cc   :  { %v786_v42 = vadd.f32 %v785_v1, %v702_v41  ;;  %v1174_v43 = vpop.f32.mrb[17].mxu0 }
 0x9cd   :  { %v788_v31 = vpop.f32.mrb[18].mxu0 }
 0x9ce   :  { %v789_v44 = vadd.f32 %v788_v31, %v702_v41  ;;  %v1175_v25 = vpop.f32.mrb[19].mxu0  ;;  %v792_v30 = vmax.f32 %v786_v42, 0.0 }
 0x9d0   :  { %v793_v45 = vmax.f32 %v789_v44, 0.0 }
 0x9d2   :  { %v794_v46 = vpack.c.bf16 %v793_v45, %v792_v30 }
 0x9d4   :  { %1193 = vmatmul.mubr.bf16.vlgmr.msra.gmra.mrb[8].mxu1 %v794_v46 }
 0x9d5   :  { %1273 = shalt.err (!%p1270_p4)
}
 0x9d6   :  { %s1274_s0 = scalar_lea.hbm %s1612_s7, 256 }
 0x9d7   :  { %p1275_p5 = scmp.ne.s32.totalorder %s1612_s7, %s1274_s0  ;;  %p1278_p6 = scmp.lt.u32.totalorder %s1274_s0, %s1612_s7 }
 0x9d9   :  { %p1280_p7 = pnand %p1278_p6, %p1275_p5 }
 0x9db   :  { %1283 = shalt.err (!%p1280_p7)
}
 0x9dc   :  { %s1291_s10 = smov 128   ;;  %s1292_s11 = smov 8   ;;  %v815_v21 = vrot.slane %v32_v40, %v478_v59 }
 0x9dd   :  { %918 = dma.vmem_to_hbm [thread:$0]  %s913_s8, 256, %s1612_s7, [#allocation3], %s1291_s10, %s1291_s10, %s1292_s11  }
 0xaa7   :  { %v898_v47 = vpop.f32.mrb[8].mxu1 }
 0xaa8   :  { %v899_v48 = vadd.f32 %v898_v47, %v815_v21  ;;  %v1194_v49 = vpop.f32.mrb[9].mxu1 }
 0xaa9   :  { %v901_v50 = vpop.f32.mrb[10].mxu1 }
 0xaaa   :  { %905 = vst [vmem:[%s1614_s9] sm:$0xff] %v899_v48  ;;  %v902_v51 = vadd.f32 %v901_v50, %v815_v21  ;;  %v1195_v52 = vpop.f32.mrb[11].mxu1 }
 0xaac   :  { %906 = vst [vmem:[%s1614_s9 + $0x8] sm:$0xff] %v902_v51 }
 0xaad   :  { %1284 = dma.done.wait [#allocation3], 256  }
 0xaae   :  { %1285 = vsyncadd [#allocation3], 4294967040 }
 0xaaf   :  { %930 = vsyncpa [#allocation3], 1 }

</bundles_post_ra>
